<compile_context>
chip_gen: v7x
topology: tpu7x:2x2x1
jax: 0.10.0
libtpu: 0.0.40
codegen_flags: <defaults>
</compile_context>

<pallas_src>
import functools

import jax
import jax.numpy as jnp
from jax.experimental import pallas as pl
from jax.experimental.pallas import tpu as pltpu


def _round_up(x, m):
    return (x + m - 1) // m * m


def _rnn_kernel(seq_len, H, O,
                x_emb_ref, w_e_ref, w_h_ref, b_ref, h0_ref, out_ref):
    """Whole-sequence RNN forward in a single kernel invocation."""
    # --- prologue, OFF the serial chain: input projection for every timestep
    # in one batched MXU matmul:  X = emb_rows @ W_e + b  ->  [S_pad, N_pad].
    x = (jnp.dot(x_emb_ref[...], w_e_ref[...],
                 preferred_element_type=jnp.float32) + b_ref[...])
    w_h = w_h_ref[...]

    # --- serial recurrence, fully unrolled (seq_len is static and small).
    # `pre` is the padded carry [hidden(H) | logits(O) | zero pad] in one
    # 128-lane row.  Rows >= H of w_h are EXACTLY zero (see pack_params), so
    # the logit / pad lanes contribute nothing to the next step.
    # TODO(synk): an even lower-latency variant would replace the per-step
    # [1,128]@[128,128] MXU dot with a pinned-RHS MXU / VPU broadcast-MAC.
    pre = h0_ref[...]
    for t in range(seq_len):
        pre = x[t:t + 1, :] + jnp.dot(pre, w_h,
                                      preferred_element_type=jnp.float32)

    # --- epilogue: masked log-softmax over the O logit lanes; pack
    # [final hidden | log-probs | pad] into a single lane-dense output row.
    lane = jax.lax.broadcasted_iota(jnp.int32, pre.shape, 1)
    is_logit = (lane >= H) & (lane < H + O)
    m = jnp.max(jnp.where(is_logit, pre, -jnp.inf), axis=1, keepdims=True)
    shifted = pre - m
    sumexp = jnp.sum(jnp.where(is_logit, jnp.exp(shifted), 0.0),
                     axis=1, keepdims=True)
    logp = shifted - jnp.log(sumexp)
    out_ref[...] = jnp.where(lane < H, pre, logp)


def pack_params(params):
    """Pad / fuse the PyTorch-style parameters into lane-dense TPU buffers."""
    emb = params["embedding"]                          # [V, E]
    w_i2h, b_i2h = params["w_i2h"], params["b_i2h"]    # [E+H, H], [1, H]
    w_i2o, b_i2o = params["w_i2o"], params["b_i2o"]    # [E+H, O], [1, O]
    V, E = emb.shape
    H = w_i2h.shape[1]
    O = w_i2o.shape[1]
    E_pad = _round_up(E, 128)                          # contraction dim
    N_pad = _round_up(H + O, 128)                      # fused output / carry

    # Lane-padded embedding table; the per-title gather happens in the wrapper.
    emb_p = jnp.zeros((V, E_pad), jnp.float32).at[:, :E].set(emb)

    # Fuse i2h & i2o along the output axis, split by input rows (emb vs hid).
    w_fused = jnp.concatenate([w_i2h, w_i2o], axis=1)  # [E+H, H+O]
    b_fused = jnp.concatenate([b_i2h, b_i2o], axis=1)  # [1, H+O]
    w_e = jnp.zeros((E_pad, N_pad), jnp.float32).at[:E, :H + O].set(w_fused[:E])
    # CORRECTNESS: rows >= H of w_h MUST stay exactly zero -- the kernel
    # carries the full padded pre-activation between steps and relies on the
    # logit / pad lanes feeding nothing forward.
    w_h = jnp.zeros((N_pad, N_pad), jnp.float32).at[:H, :H + O].set(w_fused[E:])
    b = jnp.zeros((1, N_pad), jnp.float32).at[:, :H + O].set(b_fused)

    return {"emb": emb_p, "w_e": w_e, "w_h": w_h, "b": b,
            "H": H, "O": O, "E_pad": E_pad, "N_pad": N_pad}


def make_rnn_forward(packed, seq_len, batch=1):
    """Builds a jitted forward over a whole token sequence: one pallas_call."""
    assert batch == 1, "module feeds one title (batch=1) per forward pass"
    H, O = packed["H"], packed["O"]
    E_pad, N_pad = packed["E_pad"], packed["N_pad"]
    S_pad = _round_up(max(seq_len, 1), 8)              # sublane-pad seq dim

    kernel = functools.partial(_rnn_kernel, seq_len, H, O)
    vmem = pltpu.MemorySpace.VMEM

    call = pl.pallas_call(
        kernel,
        out_shape=jax.ShapeDtypeStruct((batch, N_pad), jnp.float32),
        # Empty grid: each operand is a whole-array VMEM resident; the
        # recurrence + projection + softmax all run in this single invocation.
        in_specs=[pl.BlockSpec(memory_space=vmem)] * 5,
        out_specs=pl.BlockSpec(memory_space=vmem),
    )

    emb_p = packed["emb"]
    w_e, w_h, b = packed["w_e"], packed["w_h"], packed["b"]

    def forward(token_ids, hidden0):
        # Embedding lookup (tiny HBM gather) stays in XLA, off the serial
        # chain; projection / recurrence / log-softmax are fused in Pallas.
        rows = jnp.take(emb_p, token_ids, axis=0)                 # [S, E_pad]
        x_emb = jnp.zeros((S_pad, E_pad), jnp.float32).at[:seq_len].set(rows)
        h0 = jnp.zeros((batch, N_pad), jnp.float32).at[:, :H].set(hidden0)
        out = call(x_emb, w_e, w_h, b, h0)
        return out[:, H:H + O], out[:, :H]                        # logp, hid

    return jax.jit(forward)


def init_params(key, word_count, embedding_size, hidden_size, output_size):
    """PyTorch-style init: N(0,1) embedding, U(-1/sqrt(fan_in), ...) Linears."""
    k_emb, k_wh, k_bh, k_wo, k_bo = jax.random.split(key, 5)
    fan_in = embedding_size + hidden_size
    bound = 1.0 / jnp.sqrt(jnp.float32(fan_in))
    return {
        "embedding": jax.random.normal(
            k_emb, (word_count, embedding_size), jnp.float32),
        "w_i2h": jax.random.uniform(
            k_wh, (fan_in, hidden_size), jnp.float32, -bound, bound),
        "b_i2h": jax.random.uniform(
            k_bh, (1, hidden_size), jnp.float32, -bound, bound),
        "w_i2o": jax.random.uniform(
            k_wo, (fan_in, output_size), jnp.float32, -bound, bound),
        "b_i2o": jax.random.uniform(
            k_bo, (1, output_size), jnp.float32, -bound, bound),
    }


def reference_forward(token_ids, hidden, params):
    """Literal per-step PyTorch-module forward, in plain JAX, for checking."""
    hi = jax.lax.Precision.HIGHEST
    output = None
    for t in range(token_ids.shape[0]):
        emb = params["embedding"][token_ids[t]][None, :]
        combined = jnp.concatenate([emb, hidden], axis=1)
        new_hidden = (jnp.dot(combined, params["w_i2h"], precision=hi)
                      + params["b_i2h"])
        logits = (jnp.dot(combined, params["w_i2o"], precision=hi)
                  + params["b_i2o"])
        output = jax.nn.log_softmax(logits, axis=1)
        hidden = new_hidden
    return output, hidden


if __name__ == "__main__":
    # Shapes consistent with the module:
    #   n_chars (vocab) = 30, embedding_size = 200, n_hidden = 10,
    #   n_categories = 2, batch = 1, sequence length = 8.
    n_chars = 30
    embedding_size = 200
    n_hidden = 10
    n_categories = 2
    seq_len = 8
    batch = 1

    key = jax.random.PRNGKey(0)
    k_params, k_tokens = jax.random.split(key)
    params = init_params(k_params, n_chars, embedding_size, n_hidden,
                         n_categories)

    # title_to_tensor equivalent: a sequence of char indices in [0, n_chars).
    title_tokens = jax.random.randint(
        k_tokens, (seq_len,), 0, n_chars, dtype=jnp.int32)

    # initHidden(): zeros(1, hidden_size)
    hidden0 = jnp.zeros((batch, n_hidden), jnp.float32)

    packed = pack_params(params)
    forward = make_rnn_forward(packed, seq_len, batch)

    log_probs, final_hidden = forward(title_tokens, hidden0)
    log_probs = jax.block_until_ready(log_probs)
    final_hidden = jax.block_until_ready(final_hidden)

    assert log_probs.shape == (batch, n_categories)
    assert final_hidden.shape == (batch, n_hidden)
    # log-softmax rows must sum to 1 in probability space.
    assert jnp.allclose(jnp.sum(jnp.exp(log_probs), axis=1), 1.0, atol=1e-4)

    # Check against the literal per-step module forward (tolerance covers the
    # MXU's bf16-pass f32 matmuls vs. the HIGHEST-precision reference).
    ref_out, ref_hid = reference_forward(title_tokens, hidden0, params)
    assert jnp.allclose(log_probs, ref_out, rtol=1e-2, atol=1e-2), (
        log_probs, ref_out)
    assert jnp.allclose(final_hidden, ref_hid, rtol=1e-2, atol=1e-2), (
        final_hidden, ref_hid)

    print("KERNEL_OK")
</pallas_src>

<mosaic_0001>
module attributes {stable_mosaic.version = 11 : i64} {
  func.func @_rnn_kernel(%arg0: memref<8x256xf32, #tpu.memory_space<vmem>>, %arg1: memref<256x128xf32, #tpu.memory_space<vmem>>, %arg2: memref<128x128xf32, #tpu.memory_space<vmem>>, %arg3: memref<1x128xf32, #tpu.memory_space<vmem>>, %arg4: memref<1x128xf32, #tpu.memory_space<vmem>>, %arg5: memref<1x128xf32, #tpu.memory_space<vmem>>) attributes {dimension_semantics = [], scalar_prefetch = 0 : i64, scratch_operands = 0 : i64, tpu.core_type = #tpu.core_type<tc>} {
    %c0 = arith.constant 0 : index
    %c0_0 = arith.constant 0 : index
    %0 = vector.load %arg0[%c0, %c0_0] : memref<8x256xf32, #tpu.memory_space<vmem>>, vector<8x256xf32>
    %c0_1 = arith.constant 0 : index
    %c0_2 = arith.constant 0 : index
    %1 = vector.load %arg1[%c0_1, %c0_2] : memref<256x128xf32, #tpu.memory_space<vmem>>, vector<256x128xf32>
    %cst = arith.constant dense<0.000000e+00> : vector<8x128xf32>
    %2 = tpu.matmul %0, %1, %cst {dimension_numbers = #tpu.dot_dimension_numbers<[1], [0], [0], [1], [0, 0, 1, 1], [], []>} : vector<8x256xf32>, vector<256x128xf32>, vector<8x128xf32> -> vector<8x128xf32>
    %c0_3 = arith.constant 0 : index
    %c0_4 = arith.constant 0 : index
    %3 = vector.load %arg3[%c0_3, %c0_4] : memref<1x128xf32, #tpu.memory_space<vmem>>, vector<1x128xf32>
    %4 = vector.broadcast %3 : vector<1x128xf32> to vector<8x128xf32>
    %5 = arith.addf %2, %4 : vector<8x128xf32>
    %c0_5 = arith.constant 0 : index
    %c0_6 = arith.constant 0 : index
    %6 = vector.load %arg2[%c0_5, %c0_6] : memref<128x128xf32, #tpu.memory_space<vmem>>, vector<128x128xf32>
    %c0_7 = arith.constant 0 : index
    %c0_8 = arith.constant 0 : index
    %7 = vector.load %arg4[%c0_7, %c0_8] : memref<1x128xf32, #tpu.memory_space<vmem>>, vector<1x128xf32>
    %8 = vector.extract_strided_slice %5 {offsets = [0, 0], sizes = [1, 128], strides = [1, 1]} : vector<8x128xf32> to vector<1x128xf32>
    %cst_9 = arith.constant dense<0.000000e+00> : vector<1x128xf32>
    %9 = tpu.matmul %7, %6, %cst_9 {dimension_numbers = #tpu.dot_dimension_numbers<[1], [0], [0], [1], [0, 0, 1, 1], [], []>} : vector<1x128xf32>, vector<128x128xf32>, vector<1x128xf32> -> vector<1x128xf32>
    %10 = arith.addf %8, %9 : vector<1x128xf32>
    %11 = vector.extract_strided_slice %5 {offsets = [1, 0], sizes = [1, 128], strides = [1, 1]} : vector<8x128xf32> to vector<1x128xf32>
    %cst_10 = arith.constant dense<0.000000e+00> : vector<1x128xf32>
    %12 = tpu.matmul %10, %6, %cst_10 {dimension_numbers = #tpu.dot_dimension_numbers<[1], [0], [0], [1], [0, 0, 1, 1], [], []>} : vector<1x128xf32>, vector<128x128xf32>, vector<1x128xf32> -> vector<1x128xf32>
    %13 = arith.addf %11, %12 : vector<1x128xf32>
    %14 = vector.extract_strided_slice %5 {offsets = [2, 0], sizes = [1, 128], strides = [1, 1]} : vector<8x128xf32> to vector<1x128xf32>
    %cst_11 = arith.constant dense<0.000000e+00> : vector<1x128xf32>
    %15 = tpu.matmul %13, %6, %cst_11 {dimension_numbers = #tpu.dot_dimension_numbers<[1], [0], [0], [1], [0, 0, 1, 1], [], []>} : vector<1x128xf32>, vector<128x128xf32>, vector<1x128xf32> -> vector<1x128xf32>
    %16 = arith.addf %14, %15 : vector<1x128xf32>
    %17 = vector.extract_strided_slice %5 {offsets = [3, 0], sizes = [1, 128], strides = [1, 1]} : vector<8x128xf32> to vector<1x128xf32>
    %cst_12 = arith.constant dense<0.000000e+00> : vector<1x128xf32>
    %18 = tpu.matmul %16, %6, %cst_12 {dimension_numbers = #tpu.dot_dimension_numbers<[1], [0], [0], [1], [0, 0, 1, 1], [], []>} : vector<1x128xf32>, vector<128x128xf32>, vector<1x128xf32> -> vector<1x128xf32>
    %19 = arith.addf %17, %18 : vector<1x128xf32>
    %20 = vector.extract_strided_slice %5 {offsets = [4, 0], sizes = [1, 128], strides = [1, 1]} : vector<8x128xf32> to vector<1x128xf32>
    %cst_13 = arith.constant dense<0.000000e+00> : vector<1x128xf32>
    %21 = tpu.matmul %19, %6, %cst_13 {dimension_numbers = #tpu.dot_dimension_numbers<[1], [0], [0], [1], [0, 0, 1, 1], [], []>} : vector<1x128xf32>, vector<128x128xf32>, vector<1x128xf32> -> vector<1x128xf32>
    %22 = arith.addf %20, %21 : vector<1x128xf32>
    %23 = vector.extract_strided_slice %5 {offsets = [5, 0], sizes = [1, 128], strides = [1, 1]} : vector<8x128xf32> to vector<1x128xf32>
    %cst_14 = arith.constant dense<0.000000e+00> : vector<1x128xf32>
    %24 = tpu.matmul %22, %6, %cst_14 {dimension_numbers = #tpu.dot_dimension_numbers<[1], [0], [0], [1], [0, 0, 1, 1], [], []>} : vector<1x128xf32>, vector<128x128xf32>, vector<1x128xf32> -> vector<1x128xf32>
    %25 = arith.addf %23, %24 : vector<1x128xf32>
    %26 = vector.extract_strided_slice %5 {offsets = [6, 0], sizes = [1, 128], strides = [1, 1]} : vector<8x128xf32> to vector<1x128xf32>
    %cst_15 = arith.constant dense<0.000000e+00> : vector<1x128xf32>
    %27 = tpu.matmul %25, %6, %cst_15 {dimension_numbers = #tpu.dot_dimension_numbers<[1], [0], [0], [1], [0, 0, 1, 1], [], []>} : vector<1x128xf32>, vector<128x128xf32>, vector<1x128xf32> -> vector<1x128xf32>
    %28 = arith.addf %26, %27 : vector<1x128xf32>
    %29 = vector.extract_strided_slice %5 {offsets = [7, 0], sizes = [1, 128], strides = [1, 1]} : vector<8x128xf32> to vector<1x128xf32>
    %cst_16 = arith.constant dense<0.000000e+00> : vector<1x128xf32>
    %30 = tpu.matmul %28, %6, %cst_16 {dimension_numbers = #tpu.dot_dimension_numbers<[1], [0], [0], [1], [0, 0, 1, 1], [], []>} : vector<1x128xf32>, vector<128x128xf32>, vector<1x128xf32> -> vector<1x128xf32>
    %31 = arith.addf %29, %30 : vector<1x128xf32>
    %32 = tpu.iota {dimensions = array<i32: 1>} : vector<1x128xi32>
    %c10_i32 = arith.constant 10 : i32
    %33 = vector.broadcast %c10_i32 : i32 to vector<1x128xi32>
    %34 = arith.cmpi sge, %32, %33 : vector<1x128xi32>
    %c12_i32 = arith.constant 12 : i32
    %35 = vector.broadcast %c12_i32 : i32 to vector<1x128xi32>
    %36 = arith.cmpi slt, %32, %35 : vector<1x128xi32>
    %37 = arith.andi %34, %36 : vector<1x128xi1>
    %cst_17 = arith.constant 0xFF800000 : f32
    %38 = vector.broadcast %cst_17 : f32 to vector<1x128xf32>
    %39 = arith.select %37, %31, %38 : vector<1x128xi1>, vector<1x128xf32>
    %cst_18 = arith.constant dense<0xFF800000> : vector<1xf32>
    %40 = vector.multi_reduction <maximumf>, %39, %cst_18 [1] : vector<1x128xf32> to vector<1xf32>
    %41 = vector.shape_cast %40 : vector<1xf32> to vector<1x1xf32>
    %42 = vector.broadcast %41 : vector<1x1xf32> to vector<1x128xf32>
    %43 = arith.subf %31, %42 : vector<1x128xf32>
    %44 = math.exp %43 : vector<1x128xf32>
    %cst_19 = arith.constant 0.000000e+00 : f32
    %45 = vector.broadcast %cst_19 : f32 to vector<1x128xf32>
    %46 = arith.select %37, %44, %45 : vector<1x128xi1>, vector<1x128xf32>
    %cst_20 = arith.constant dense<0.000000e+00> : vector<1xf32>
    %47 = vector.multi_reduction <add>, %46, %cst_20 [1] : vector<1x128xf32> to vector<1xf32>
    %48 = vector.shape_cast %47 : vector<1xf32> to vector<1x1xf32>
    %49 = math.log %48 : vector<1x1xf32>
    %50 = vector.broadcast %49 : vector<1x1xf32> to vector<1x128xf32>
    %51 = arith.subf %43, %50 : vector<1x128xf32>
    %c10_i32_21 = arith.constant 10 : i32
    %52 = vector.broadcast %c10_i32_21 : i32 to vector<1x128xi32>
    %53 = arith.cmpi slt, %32, %52 : vector<1x128xi32>
    %54 = arith.select %53, %31, %51 : vector<1x128xi1>, vector<1x128xf32>
    %c0_22 = arith.constant 0 : index
    %c0_23 = arith.constant 0 : index
    %55 = vector.load %arg5[%c0_22, %c0_23] : memref<1x128xf32, #tpu.memory_space<vmem>>, vector<1x128xf32>
    tpu.vector_store %arg5[%c0_22, %c0_23], %54 {strides = array<i32>} : memref<1x128xf32, #tpu.memory_space<vmem>>, vector<1x128xf32>,
    return
  }
}

</mosaic_0001>

<bundles_post_ra>
// kernel: forward.1
= control target key start
LH: loop header
LB: loop body
LE: loop exit
PB: predicated region body
PF: predicated region fallthrough
CT: control target
= control target key end

     0   :  { %10 = vsyncpa [#allocation3], 0  ;;  %s1507_s18 = smov [#allocation2]   ;;  %s1788_s0 = inlined_call_operand.vmem [shape: f32[8,256], index: 0, kind: input, shape index: {}]   ;;  %s1789_s1 = inlined_call_operand.hbm [shape: f32[256,128], index: 1, kind: input, shape index: {}]   ;;  %s1790_s2 = inlined_call_operand.vmem [shape: f32[128,128], index: 2, kind: input, shape index: {}]   ;;  %s1791_s3 = inlined_call_operand.vmem [shape: f32[1,128], index: 3, kind: input, shape index: {}]   ;;  %s1792_s4 = inlined_call_operand.vmem [shape: f32[1,128], index: 4, kind: input, shape index: {}]   ;;  %s1793_s5 = inlined_call_operand.vmem [shape: f32[1,128], index: 5, kind: output, shape index: {}]  }
   0x1   :  { %s18_s19 = sshll.u32 %s1507_s18, 4  ;;  %s1483_s22 = scalar_lea.hbm %s1789_s1, 4096  ;;  %s19_s19 = int_to_ptr.vmem [resolvable:$true] %s18_s19 }
   0x2   :  { %p1484_p0 = scmp.ne.s32.totalorder %s1789_s1, %s1483_s22  ;;  %p1487_p1 = scmp.lt.u32.totalorder %s1483_s22, %s1789_s1 }
   0x4   :  { %p1489_p2 = pnand %p1487_p1, %p1484_p0 }
   0x6   :  { %1492 = shalt.err (!%p1489_p2)
}
   0x7   :  { %s1493_s27 = scalar_lea.vmem %s19_s19, 4096  ;;  %p1498_p4 = scmp.lt.s32.totalorder %s19_s19, %s19_s19 }
   0x8   :  { %p1494_p3 = scmp.ne.s32.totalorder %s19_s19, %s1493_s27  ;;  %p1499_p5 = scmp.lt.s32.totalorder %s1493_s27, %s1493_s27 }
   0xa   :  { %p1500_p6 = por %p1499_p5, %p1498_p4 }
   0xc   :  { %p1501_p7 = pnand %p1500_p6, %p1494_p3 }
   0xe   :  { %1504 = shalt.err (!%p1501_p7)
}
   0xf   :  { %s1508_s28 = smov 128   ;;  %s1509_s29 = smov 8  }
  0x10   :  { %24 = dma.hbm_to_vmem [thread:$0]  %s1789_s1, 4096, %s19_s19, [#allocation3], %s1508_s28, %s1508_s28, %s1509_s29  }
  0x11   :  { %1505 = dma.done.wait [#allocation3], 4096  }
  0x12   :  { %1506 = vsyncadd [#allocation3], 4294963200  ;;  %v1510_v0 = vmov 0.0|0.0   ;;  %vm1511_vm0 = vmmov 0   ;;  %v1512_v1 = vmov 0.0   ;;  %v52_v2 = vld [vmem:[#allocation2 + $0x80] sm:$0xff] }
  0x13   :  { %1281 = vmatprep.subr.bf16.mxu1 %v1510_v0  ;;  %1001 = vmatprep.mubr.msk.f32.mxu1 %vm1511_vm0, %v1512_v1  ;;  %v53_v3 = vld [vmem:[#allocation2 + $0x88] sm:$0xff]  ;;  %v36_v4 = vld [vmem:[#allocation2] sm:$0xff]  ;;  %v54_v7 = vld [vmem:[#allocation2 + $0x90] sm:$0xff]  ;;  %vm775_vm4 = vcmask 1047559  }
  0x14   :  { %v1249_v5 = vpack.c.bf16 %v53_v3, %v52_v2  ;;  %v37_v6 = vld [vmem:[#allocation2 + $0x8] sm:$0xff]  ;;  %v55_v8 = vld [vmem:[#allocation2 + $0x98] sm:$0xff]  ;;  %v38_v11 = vld [vmem:[#allocation2 + $0x10] sm:$0xff] }
  0x15   :  { %v1251_v9 = vpack.c.bf16 %v37_v6, %v36_v4  ;;  %v1253_v10 = vpack.c.bf16 %v55_v8, %v54_v7  ;;  %v39_v12 = vld [vmem:[#allocation2 + $0x18] sm:$0xff]  ;;  %v145_v13 = vld [vmem:[%s1790_s2] sm:$0xff]  ;;  %v146_v14 = vld [vmem:[%s1790_s2 + $0x8] sm:$0xff] }
  0x16   :  { %1250 = vmatprep.subr.bf16.mxu0 %v1249_v5  ;;  %v56_v15 = vld [vmem:[#allocation2 + $0xa0] sm:$0xff]  ;;  %v57_v16 = vld [vmem:[#allocation2 + $0xa8] sm:$0xff]  ;;  %v1255_v17 = vpack.c.bf16 %v39_v12, %v38_v11  ;;  %v1564_v18 = vpack.c.bf16 %v146_v14, %v145_v13  ;;  %v147_v19 = vld [vmem:[%s1790_s2 + $0x10] sm:$0xff] }
  0x17   :  { %1252 = vmatpush3.bf16.msra.mxu0 %v1251_v9  ;;  %v1257_v20 = vpack.c.bf16 %v57_v16, %v56_v15  ;;  %v40_v21 = vld [vmem:[#allocation2 + $0x20] sm:$0xff]  ;;  %v41_v22 = vld [vmem:[#allocation2 + $0x28] sm:$0xff]  ;;  %v148_v23 = vld [vmem:[%s1790_s2 + $0x18] sm:$0xff] }
  0x18   :  { %1254 = vmatprep.subr.bf16.mxu0 %v1253_v10  ;;  %1283 = vmatpush3.bf16.msra.mxu1 %v1564_v18  ;;  %v1573_v24 = vpack.c.bf16 %v148_v23, %v147_v19  ;;  %v58_v25 = vld [vmem:[#allocation2 + $0xb0] sm:$0xff]  ;;  %v59_v26 = vld [vmem:[#allocation2 + $0xb8] sm:$0xff]  ;;  %v149_v27 = vld [vmem:[%s1790_s2 + $0x20] sm:$0xff]  ;;  %v1259_v29 = vpack.c.bf16 %v41_v22, %v40_v21 }
  0x19   :  { %1284 = vmatprep.subr.bf16.mxu1 %v1510_v0  ;;  %v150_v28 = vld [vmem:[%s1790_s2 + $0x28] sm:$0xff]  ;;  %v1261_v30 = vpack.c.bf16 %v59_v26, %v58_v25  ;;  %v42_v31 = vld [vmem:[#allocation2 + $0x30] sm:$0xff]  ;;  %v43_v32 = vld [vmem:[#allocation2 + $0x38] sm:$0xff] }
  0x1a   :  { %v1583_v33 = vpack.c.bf16 %v150_v28, %v149_v27  ;;  %v60_v34 = vld [vmem:[#allocation2 + $0xc0] sm:$0xff]  ;;  %v61_v35 = vld [vmem:[#allocation2 + $0xc8] sm:$0xff]  ;;  %v151_v36 = vld [vmem:[%s1790_s2 + $0x30] sm:$0xff]  ;;  %v1263_v38 = vpack.c.bf16 %v43_v32, %v42_v31 }
  0x1b   :  { %1256 = vmatpush3.bf16.msra.mxu0 %v1255_v17  ;;  %v152_v37 = vld [vmem:[%s1790_s2 + $0x38] sm:$0xff]  ;;  %v1265_v39 = vpack.c.bf16 %v61_v35, %v60_v34  ;;  %v44_v40 = vld [vmem:[#allocation2 + $0x40] sm:$0xff]  ;;  %v45_v41 = vld [vmem:[#allocation2 + $0x48] sm:$0xff] }
  0x1c   :  { %1258 = vmatprep.subr.bf16.mxu0 %v1257_v20  ;;  %1286 = vmatpush3.bf16.msra.mxu1 %v1573_v24  ;;  %v1593_v42 = vpack.c.bf16 %v152_v37, %v151_v36  ;;  %v62_v43 = vld [vmem:[#allocation2 + $0xd0] sm:$0xff]  ;;  %v63_v44 = vld [vmem:[#allocation2 + $0xd8] sm:$0xff]  ;;  %v153_v45 = vld [vmem:[%s1790_s2 + $0x40] sm:$0xff]  ;;  %v1267_v48 = vpack.c.bf16 %v45_v41, %v44_v40 }
  0x1d   :  { %1287 = vmatprep.subr.bf16.mxu1 %v1510_v0  ;;  %v154_v46 = vld [vmem:[%s1790_s2 + $0x48] sm:$0xff]  ;;  %v1269_v49 = vpack.c.bf16 %v63_v44, %v62_v43  ;;  %v46_v50 = vld [vmem:[#allocation2 + $0x50] sm:$0xff]  ;;  %v47_v51 = vld [vmem:[#allocation2 + $0x58] sm:$0xff] }
  0x1e   :  { %v35_v47 = vld [vmem:[%s1788_s0 + $0x8] sm:$0xff]  ;;  %v1606_v52 = vpack.c.bf16 %v154_v46, %v153_v45  ;;  %v64_v53 = vld [vmem:[#allocation2 + $0xe0] sm:$0xff]  ;;  %v155_v55 = vld [vmem:[%s1790_s2 + $0x50] sm:$0xff]  ;;  %v1271_v57 = vpack.c.bf16 %v47_v51, %v46_v50 }
  0x1f   :  { %1260 = vmatpush3.bf16.msra.mxu0 %v1259_v29  ;;  %139 = vmatprep.mubr.f32.mxu0 %v35_v47  ;;  %v65_v54 = vld [vmem:[#allocation2 + $0xe8] sm:$0xff]  ;;  %v156_v56 = vld [vmem:[%s1790_s2 + $0x58] sm:$0xff]  ;;  %v48_v59 = vld [vmem:[#allocation2 + $0x60] sm:$0xff] }
  0x20   :  { %1262 = vmatprep.subr.bf16.mxu0 %v1261_v30  ;;  %1289 = vmatpush3.bf16.msra.mxu1 %v1583_v33  ;;  %v1273_v58 = vpack.c.bf16 %v65_v54, %v64_v53  ;;  %v49_v60 = vld [vmem:[#allocation2 + $0x68] sm:$0xff]  ;;  %v1616_v61 = vpack.c.bf16 %v156_v56, %v155_v55  ;;  %v66_v62 = vld [vmem:[#allocation2 + $0xf0] sm:$0xff]  ;;  %v67_v63 = vld [vmem:[#allocation2 + $0xf8] sm:$0xff] }
  0x21   :  { %1290 = vmatprep.subr.bf16.mxu1 %v1510_v0  ;;  %v157_v2 = vld [vmem:[%s1790_s2 + $0x60] sm:$0xff]  ;;  %v158_v3 = vld [vmem:[%s1790_s2 + $0x68] sm:$0xff]  ;;  %v1275_v4 = vpack.c.bf16 %v49_v60, %v48_v59  ;;  %v1277_v5 = vpack.c.bf16 %v67_v63, %v66_v62  ;;  %v50_v6 = vld [vmem:[#allocation2 + $0x70] sm:$0xff] }
  0x22   :  { %v51_v7 = vld [vmem:[#allocation2 + $0x78] sm:$0xff]  ;;  %v1626_v8 = vpack.c.bf16 %v158_v3, %v157_v2  ;;  %v159_v9 = vld [vmem:[%s1790_s2 + $0x70] sm:$0xff]  ;;  %v34_v13 = vld [vmem:[%s1788_s0] sm:$0xff] }
  0x23   :  { %1264 = vmatpush3.bf16.msra.mxu0 %v1263_v38  ;;  %v160_v10 = vld [vmem:[%s1790_s2 + $0x78] sm:$0xff]  ;;  %v1279_v11 = vpack.c.bf16 %v51_v7, %v50_v6  ;;  %v161_v14 = vld [vmem:[%s1792_s4] sm:$0x1] }
  0x24   :  { %1266 = vmatprep.subr.bf16.mxu0 %v1265_v39  ;;  %1292 = vmatpush3.bf16.msra.mxu1 %v1593_v42  ;;  %v1636_v12 = vpack.c.bf16 %v160_v10, %v159_v9  ;;  %v797_v16 = vld [vmem:[%s1791_s3] ss:$0 sm:$0xff] }
  0x25   :  { %1293 = vmatprep.subr.bf16.mxu1 %v1510_v0 }
  0x27   :  { %1268 = vmatpush3.bf16.msra.mxu0 %v1267_v48 }
  0x28   :  { %1270 = vmatprep.subr.bf16.mxu0 %v1269_v49  ;;  %1295 = vmatpush3.bf16.msra.mxu1 %v1606_v52 }
  0x29   :  { %1296 = vmatprep.subr.bf16.mxu1 %v1510_v0 }
  0x2b   :  { %1272 = vmatpush3.bf16.msra.mxu0 %v1271_v57 }
  0x2c   :  { %1274 = vmatprep.subr.bf16.mxu0 %v1273_v58  ;;  %1298 = vmatpush3.bf16.msra.mxu1 %v1616_v61 }
  0x2d   :  { %1299 = vmatprep.subr.bf16.mxu1 %v1510_v0 }
  0x2f   :  { %1276 = vmatpush3.bf16.msra.mxu0 %v1275_v4 }
  0x30   :  { %1278 = vmatprep.subr.bf16.mxu0 %v1277_v5  ;;  %1301 = vmatpush3.bf16.msra.mxu1 %v1626_v8 }
  0x31   :  { %1302 = vmatprep.subr.bf16.mxu1 %v1510_v0 }
  0x33   :  { %1280 = vmatpush3.bf16.msra.mxu0 %v1279_v11 }
  0x34   :  { %1305 = vmatprep.subr.bf16.mxu0 %v1510_v0  ;;  %1304 = vmatpush3.bf16.msra.mxu1 %v1636_v12 }
  0x35   :  { %1329 = vmatprep.subr.bf16.mxu1 %v1510_v0 }
  0x36   :  { %140 = vmatmul.mubr.f32.vlgmr.msra.gmra.mrb[0].mxu0 %v34_v13 }
  0x37   :  { %1307 = vmatpush3.bf16.msra.mxu0 %v1564_v18  ;;  %1036 = vmatprep.mubr.msk.f32.mxu0 %vm1511_vm0, %v1512_v1 }
  0x38   :  { %1002 = vmatmul.mubr.f32.vlgmr.msra.gmra.mrb[0].mxu1 %v161_v14  ;;  %1308 = vmatprep.subr.bf16.mxu0 %v1510_v0 }
  0x39   :  { %1331 = vmatpush3.bf16.msra.mxu1 %v1564_v18  ;;  %1071 = vmatprep.mubr.msk.f32.mxu1 %vm1511_vm0, %v1512_v1 }
  0x3a   :  { %1332 = vmatprep.subr.bf16.mxu1 %v1510_v0 }
  0x3b   :  { %1310 = vmatpush3.bf16.msra.mxu0 %v1573_v24 }
  0x3c   :  { %1311 = vmatprep.subr.bf16.mxu0 %v1510_v0 }
  0x3d   :  { %1334 = vmatpush3.bf16.msra.mxu1 %v1573_v24 }
  0x3e   :  { %1335 = vmatprep.subr.bf16.mxu1 %v1510_v0 }
  0x3f   :  { %1313 = vmatpush3.bf16.msra.mxu0 %v1583_v33 }
  0x40   :  { %1314 = vmatprep.subr.bf16.mxu0 %v1510_v0 }
  0x41   :  { %1337 = vmatpush3.bf16.msra.mxu1 %v1583_v33 }
  0x42   :  { %1338 = vmatprep.subr.bf16.mxu1 %v1510_v0 }
  0x43   :  { %1316 = vmatpush3.bf16.msra.mxu0 %v1593_v42 }
  0x44   :  { %1317 = vmatprep.subr.bf16.mxu0 %v1510_v0 }
  0x45   :  { %1340 = vmatpush3.bf16.msra.mxu1 %v1593_v42 }
  0x46   :  { %1341 = vmatprep.subr.bf16.mxu1 %v1510_v0 }
  0x47   :  { %1319 = vmatpush3.bf16.msra.mxu0 %v1606_v52 }
  0x48   :  { %1320 = vmatprep.subr.bf16.mxu0 %v1510_v0 }
  0x49   :  { %1343 = vmatpush3.bf16.msra.mxu1 %v1606_v52 }
  0x4a   :  { %1344 = vmatprep.subr.bf16.mxu1 %v1510_v0 }
  0x4b   :  { %1322 = vmatpush3.bf16.msra.mxu0 %v1616_v61 }
  0x4c   :  { %1323 = vmatprep.subr.bf16.mxu0 %v1510_v0 }
  0x4d   :  { %1346 = vmatpush3.bf16.msra.mxu1 %v1616_v61 }
  0x4e   :  { %1347 = vmatprep.subr.bf16.mxu1 %v1510_v0 }
  0x4f   :  { %1325 = vmatpush3.bf16.msra.mxu0 %v1626_v8 }
  0x50   :  { %1326 = vmatprep.subr.bf16.mxu0 %v1510_v0 }
  0x51   :  { %1349 = vmatpush3.bf16.msra.mxu1 %v1626_v8 }
  0x52   :  { %1350 = vmatprep.subr.bf16.mxu1 %v1510_v0 }
  0x53   :  { %1328 = vmatpush3.bf16.msra.mxu0 %v1636_v12 }
  0x54   :  { %1353 = vmatprep.subr.bf16.mxu0 %v1510_v0 }
  0x55   :  { %1352 = vmatpush3.bf16.msra.mxu1 %v1636_v12 }
  0x56   :  { %1377 = vmatprep.subr.bf16.mxu1 %v1510_v0 }
 0x109   :  { %v830_v15 = vpop.f32.mrb[0].mxu0 }
 0x10a   :  { %v831_v17 = vpop.f32.mrb[1].mxu0 }
 0x10b   :  { %v832_v19 = vadd.f32 %v831_v17, %v830_v15  ;;  %v228_v20 = vpop.f32.mrb[0].mxu1 }
 0x10c   :  { %v1003_v21 = vpop.f32.mrb[1].mxu1 }
 0x10d   :  { %v1687_v22 = vadd.f32 %v832_v19, %v797_v16 }
 0x10f   :  { %v232_v23 = vadd.f32 %v228_v20, %v1687_v22 }
 0x111   :  { %1037 = vmatmul.mubr.f32.vlgmr.msra.gmra.mrb[2].mxu0 %v232_v23 }
 0x112   :  { %1355 = vmatpush3.bf16.msra.mxu0 %v1564_v18  ;;  %1106 = vmatprep.mubr.msk.f32.mxu0 %vm1511_vm0, %v1512_v1 }
 0x113   :  { %1356 = vmatprep.subr.bf16.mxu0 %v1510_v0 }
 0x116   :  { %1358 = vmatpush3.bf16.msra.mxu0 %v1573_v24 }
 0x117   :  { %1359 = vmatprep.subr.bf16.mxu0 %v1510_v0 }
 0x11a   :  { %1361 = vmatpush3.bf16.msra.mxu0 %v1583_v33 }
 0x11b   :  { %1362 = vmatprep.subr.bf16.mxu0 %v1510_v0 }
 0x11e   :  { %1364 = vmatpush3.bf16.msra.mxu0 %v1593_v42 }
 0x11f   :  { %1365 = vmatprep.subr.bf16.mxu0 %v1510_v0 }
 0x122   :  { %1367 = vmatpush3.bf16.msra.mxu0 %v1606_v52 }
 0x123   :  { %1368 = vmatprep.subr.bf16.mxu0 %v1510_v0 }
 0x126   :  { %1370 = vmatpush3.bf16.msra.mxu0 %v1616_v61 }
 0x127   :  { %1371 = vmatprep.subr.bf16.mxu0 %v1510_v0 }
 0x12a   :  { %1373 = vmatpush3.bf16.msra.mxu0 %v1626_v8 }
 0x12b   :  { %1374 = vmatprep.subr.bf16.mxu0 %v1510_v0 }
 0x12e   :  { %1376 = vmatpush3.bf16.msra.mxu0 %v1636_v12 }
 0x12f   :  { %1401 = vmatprep.subr.bf16.mxu0 %v1510_v0 }
 0x1e4   :  { %v299_v25 = vpop.f32.mrb[2].mxu0 }
 0x1e5   :  { %v304_v26 = vrot.slane %v299_v25, 7  ;;  %v1038_v27 = vpop.f32.mrb[3].mxu0 }
 0x1e7   :  { %v306_v28 = vadd.f32 %v304_v26, %v1687_v22 }
 0x1e9   :  { %v308_v29 = vrot.slane %v306_v28, 1 }
 0x1eb   :  { %1072 = vmatmul.mubr.f32.vlgmr.msra.gmra.mrb[2].mxu1 %v308_v29 }
 0x1ec   :  { %1379 = vmatpush3.bf16.msra.mxu1 %v1564_v18  ;;  %1141 = vmatprep.mubr.msk.f32.mxu1 %vm1511_vm0, %v1512_v1 }
 0x1ed   :  { %1380 = vmatprep.subr.bf16.mxu1 %v1510_v0 }
 0x1f0   :  { %1382 = vmatpush3.bf16.msra.mxu1 %v1573_v24 }
 0x1f1   :  { %1383 = vmatprep.subr.bf16.mxu1 %v1510_v0 }
 0x1f4   :  { %1385 = vmatpush3.bf16.msra.mxu1 %v1583_v33 }
 0x1f5   :  { %1386 = vmatprep.subr.bf16.mxu1 %v1510_v0 }
 0x1f8   :  { %1388 = vmatpush3.bf16.msra.mxu1 %v1593_v42 }
 0x1f9   :  { %1389 = vmatprep.subr.bf16.mxu1 %v1510_v0 }
 0x1fc   :  { %1391 = vmatpush3.bf16.msra.mxu1 %v1606_v52 }
 0x1fd   :  { %1392 = vmatprep.subr.bf16.mxu1 %v1510_v0 }
 0x200   :  { %1394 = vmatpush3.bf16.msra.mxu1 %v1616_v61 }
 0x201   :  { %1395 = vmatprep.subr.bf16.mxu1 %v1510_v0 }
 0x204   :  { %1397 = vmatpush3.bf16.msra.mxu1 %v1626_v8 }
 0x205   :  { %1398 = vmatprep.subr.bf16.mxu1 %v1510_v0 }
 0x208   :  { %1400 = vmatpush3.bf16.msra.mxu1 %v1636_v12 }
 0x209   :  { %1425 = vmatprep.subr.bf16.mxu1 %v1510_v0 }
 0x2be   :  { %v376_v30 = vpop.f32.mrb[2].mxu1 }
 0x2bf   :  { %v381_v31 = vrot.slane %v376_v30, 6  ;;  %v1073_v32 = vpop.f32.mrb[3].mxu1 }
 0x2c1   :  { %v383_v34 = vadd.f32 %v381_v31, %v1687_v22 }
 0x2c3   :  { %v385_v35 = vrot.slane %v383_v34, 2 }
 0x2c5   :  { %1107 = vmatmul.mubr.f32.vlgmr.msra.gmra.mrb[4].mxu0 %v385_v35 }
 0x2c6   :  { %1403 = vmatpush3.bf16.msra.mxu0 %v1564_v18  ;;  %1176 = vmatprep.mubr.msk.f32.mxu0 %vm1511_vm0, %v1512_v1 }
 0x2c7   :  { %1404 = vmatprep.subr.bf16.mxu0 %v1510_v0 }
 0x2ca   :  { %1406 = vmatpush3.bf16.msra.mxu0 %v1573_v24 }
 0x2cb   :  { %1407 = vmatprep.subr.bf16.mxu0 %v1510_v0 }
 0x2ce   :  { %1409 = vmatpush3.bf16.msra.mxu0 %v1583_v33 }
 0x2cf   :  { %1410 = vmatprep.subr.bf16.mxu0 %v1510_v0 }
 0x2d2   :  { %1412 = vmatpush3.bf16.msra.mxu0 %v1593_v42 }
 0x2d3   :  { %1413 = vmatprep.subr.bf16.mxu0 %v1510_v0 }
 0x2d6   :  { %1415 = vmatpush3.bf16.msra.mxu0 %v1606_v52 }
 0x2d7   :  { %1416 = vmatprep.subr.bf16.mxu0 %v1510_v0 }
 0x2da   :  { %1418 = vmatpush3.bf16.msra.mxu0 %v1616_v61 }
 0x2db   :  { %1419 = vmatprep.subr.bf16.mxu0 %v1510_v0 }
 0x2de   :  { %1421 = vmatpush3.bf16.msra.mxu0 %v1626_v8 }
 0x2df   :  { %1422 = vmatprep.subr.bf16.mxu0 %v1510_v0 }
 0x2e2   :  { %1424 = vmatpush3.bf16.msra.mxu0 %v1636_v12 }
 0x2e3   :  { %1449 = vmatprep.subr.bf16.mxu0 %v1510_v0 }
 0x398   :  { %v453_v36 = vpop.f32.mrb[4].mxu0 }
 0x399   :  { %v458_v37 = vrot.slane %v453_v36, 5  ;;  %v1108_v38 = vpop.f32.mrb[5].mxu0 }
 0x39b   :  { %v460_v39 = vadd.f32 %v458_v37, %v1687_v22 }
 0x39d   :  { %v462_v40 = vrot.slane %v460_v39, 3 }
 0x39f   :  { %1142 = vmatmul.mubr.f32.vlgmr.msra.gmra.mrb[4].mxu1 %v462_v40 }
 0x3a0   :  { %1427 = vmatpush3.bf16.msra.mxu1 %v1564_v18  ;;  %1211 = vmatprep.mubr.msk.f32.mxu1 %vm1511_vm0, %v1512_v1 }
 0x3a1   :  { %1428 = vmatprep.subr.bf16.mxu1 %v1510_v0 }
 0x3a4   :  { %1430 = vmatpush3.bf16.msra.mxu1 %v1573_v24 }
 0x3a5   :  { %1431 = vmatprep.subr.bf16.mxu1 %v1510_v0 }
 0x3a8   :  { %1433 = vmatpush3.bf16.msra.mxu1 %v1583_v33 }
 0x3a9   :  { %1434 = vmatprep.subr.bf16.mxu1 %v1510_v0 }
 0x3ac   :  { %1436 = vmatpush3.bf16.msra.mxu1 %v1593_v42 }
 0x3ad   :  { %1437 = vmatprep.subr.bf16.mxu1 %v1510_v0 }
 0x3b0   :  { %1439 = vmatpush3.bf16.msra.mxu1 %v1606_v52 }
 0x3b1   :  { %1440 = vmatprep.subr.bf16.mxu1 %v1510_v0 }
 0x3b4   :  { %1442 = vmatpush3.bf16.msra.mxu1 %v1616_v61 }
 0x3b5   :  { %1443 = vmatprep.subr.bf16.mxu1 %v1510_v0 }
 0x3b8   :  { %1445 = vmatpush3.bf16.msra.mxu1 %v1626_v8 }
 0x3b9   :  { %1446 = vmatprep.subr.bf16.mxu1 %v1510_v0 }
 0x3bc   :  { %1448 = vmatpush3.bf16.msra.mxu1 %v1636_v12 }
 0x472   :  { %v530_v41 = vpop.f32.mrb[4].mxu1 }
 0x473   :  { %v535_v43 = vrot.slane %v530_v41, 4  ;;  %v1143_v44 = vpop.f32.mrb[5].mxu1 }
 0x475   :  { %v537_v45 = vadd.f32 %v535_v43, %v1687_v22 }
 0x477   :  { %v539_v46 = vrot.slane %v537_v45, 4 }
 0x479   :  { %1177 = vmatmul.mubr.f32.vlgmr.msra.gmra.mrb[6].mxu0 %v539_v46 }
 0x47a   :  { %1451 = vmatpush3.bf16.msra.mxu0 %v1564_v18  ;;  %1246 = vmatprep.mubr.msk.f32.mxu0 %vm1511_vm0, %v1512_v1 }
 0x47b   :  { %1452 = vmatprep.subr.bf16.mxu0 %v1510_v0 }
 0x47e   :  { %1454 = vmatpush3.bf16.msra.mxu0 %v1573_v24 }
 0x47f   :  { %1455 = vmatprep.subr.bf16.mxu0 %v1510_v0 }
 0x482   :  { %1457 = vmatpush3.bf16.msra.mxu0 %v1583_v33 }
 0x483   :  { %1458 = vmatprep.subr.bf16.mxu0 %v1510_v0 }
 0x486   :  { %1460 = vmatpush3.bf16.msra.mxu0 %v1593_v42 }
 0x487   :  { %1461 = vmatprep.subr.bf16.mxu0 %v1510_v0 }
 0x48a   :  { %1463 = vmatpush3.bf16.msra.mxu0 %v1606_v52  ;;  %v769_v52 = vlaneseq }
 0x48b   :  { %1464 = vmatprep.subr.bf16.mxu0 %v1510_v0 }
 0x48c   :  { %v770_v53 = vand.u32 127, %v769_v52 }
 0x48e   :  { %1466 = vmatpush3.bf16.msra.mxu0 %v1616_v61  ;;  %vm771_vm1 = vcmp.ge.s32.totalorder %v770_v53, 10  ;;  %vm772_vm2 = vcmp.lt.s32.totalorder %v770_v53, 12  ;;  %vm789_vm5 = vcmp.lt.s32.totalorder %v770_v53, 10 }
 0x48f   :  { %1467 = vmatprep.subr.bf16.mxu0 %v1510_v0  ;;  %vm773_vm3 = vmand %vm771_vm1, %vm772_vm2 }
 0x492   :  { %1469 = vmatpush3.bf16.msra.mxu0 %v1626_v8 }
 0x493   :  { %1470 = vmatprep.subr.bf16.mxu0 %v1510_v0 }
 0x496   :  { %1472 = vmatpush3.bf16.msra.mxu0 %v1636_v12 }
 0x54c   :  { %v607_v1 = vpop.f32.mrb[6].mxu0 }
 0x54d   :  { %v612_v18 = vrot.slane %v607_v1, 3  ;;  %v1178_v24 = vpop.f32.mrb[7].mxu0 }
 0x54f   :  { %v614_v33 = vadd.f32 %v612_v18, %v1687_v22 }
 0x551   :  { %v616_v42 = vrot.slane %v614_v33, 5 }
 0x553   :  { %1212 = vmatmul.mubr.f32.vlgmr.msra.gmra.mrb[6].mxu1 %v616_v42 }
 0x626   :  { %v684_v47 = vpop.f32.mrb[6].mxu1 }
 0x627   :  { %v689_v48 = vrot.slane %v684_v47, 2  ;;  %v1213_v49 = vpop.f32.mrb[7].mxu1 }
 0x629   :  { %v691_v50 = vadd.f32 %v689_v48, %v1687_v22 }
 0x62b   :  { %v693_v51 = vrot.slane %v691_v50, 6 }
 0x62d   :  { %1247 = vmatmul.mubr.f32.vlgmr.msra.gmra.mrb[8].mxu0 %v693_v51 }
 0x700   :  { %v761_v0 = vpop.f32.mrb[8].mxu0 }
 0x701   :  { %v766_v54 = vrot.slane %v761_v0, 1  ;;  %v1248_v55 = vpop.f32.mrb[9].mxu0 }
 0x703   :  { %v768_v56 = vadd.f32 %v766_v54, %v1687_v22 }
 0x705   :  { %v774_v57 = vsel %vm773_vm3, %v768_v56, -inf }
 0x706   :  { %v776_v58 = vsel %vm775_vm4, %v774_v57, -inf }
 0x707   :  { %777 = vmax.xlane.f32.xlu0 %v776_v58 }
 0x794   :  { %v778_v59 = vpop.xlane.xlu0 %777 }
 0x795   :  { %v779_v60 = vsub.f32 %v768_v56, %v778_v59 }
 0x797   :  { %v780_v61 = vmul.f32 1.442695, %v779_v60 }
 0x799   :  { %1479 = vpow2.f32 %v780_v61 }
 0x7a3   :  { %v1480_v62 = vpop.eup %1479 }
 0x7a4   :  { %v782_v63 = vsel %vm773_vm3, %v1480_v62, 0.0 }
 0x7a5   :  { %v783_v2 = vsel %vm775_vm4, %v782_v63, 0.0 }
 0x7a6   :  { %784 = vadd.xlane.f32.xlu0 %v783_v2 }
 0x833   :  { %v785_v3 = vpop.xlane.xlu0 %784 }
 0x834   :  { %1481 = vlog2.f32 %v785_v3 }
 0x83e   :  { %v1482_v4 = vpop.eup %1481 }
 0x83f   :  { %v787_v5 = vmul.f32 0.6931472, %v1482_v4 }
 0x841   :  { %v788_v6 = vsub.f32 %v779_v60, %v787_v5 }
 0x843   :  { %v790_v7 = vsel %vm789_vm5, %v768_v56, %v788_v6 }
 0x844   :  { %791 = vst [vmem:[%s1793_s5 - $0x7] sm:$0x80] %v790_v7 }
 0x845   :  { %796 = vsyncpa [#allocation3], 1 }

</bundles_post_ra>
